<compile_context>
chip_gen: v5e
topology: v5e:2x2
jax: 0.10.0
libtpu: 0.0.40
codegen_flags: <defaults>
</compile_context>

<pallas_src>
from functools import partial

import numpy as np
import jax
import jax.numpy as jnp
from jax import lax
from jax.experimental import pallas as pl
from jax.experimental.pallas import tpu as pltpu


def _lstm_kernel(gx_ref, whh_hbm_ref, h_out_ref, c_out_ref,
                 whh_sc, h_sc, c_sc, copy_sem, *, unroll):
    """One grid step == T_BLK LSTM time steps for one batch block.

    gx_ref:      (T_BLK, B, 4H) bf16  precomputed x@W_ih + bias (time-major)
    whh_hbm_ref: (H, 4H) bf16         recurrent weights, left in HBM (pl.ANY)
    h_out_ref:   (T_BLK, B, H)        hidden-state outputs for this block
    c_out_ref:   (T_BLK, B, H)        cell-state outputs for this block
    whh_sc:      (H, 4H) bf16         VMEM-resident single copy of W_hh
    h_sc, c_sc:  (B, H) f32           recurrent state carried across time blocks
    copy_sem:    DMA semaphore for the one-time W_hh copy
    """
    t = pl.program_id(1)          # time-block index (sequential axis)

    @pl.when(t == 0)
    def _init():
        # Single-buffered, (re)done only at the start of each batch block:
        # HBM -> VMEM copy of the loop-invariant recurrent weights, plus
        # zero-initialization of the recurrent state.
        cp = pltpu.make_async_copy(whh_hbm_ref, whh_sc, copy_sem)
        cp.start()
        cp.wait()
        h_sc[...] = jnp.zeros_like(h_sc)
        c_sc[...] = jnp.zeros_like(c_sc)

    hidden = h_sc.shape[-1]
    t_blk = gx_ref.shape[0]
    w_hh = whh_sc[...]            # (H, 4H) bf16, resident across all steps

    def body(k, carry):
        h, c = carry              # f32 (B, H), register-carried
        # gates = (x_t @ W_ih + b)  [precomputed, bf16]  +  h_{t-1} @ W_hh
        gates = (gx_ref[k].astype(jnp.float32)
                 + jnp.dot(h.astype(w_hh.dtype), w_hh,
                           preferred_element_type=jnp.float32))
        # chunk(4, dim=1) order in the reference: f, i, o, g
        f = gates[:, 0 * hidden:1 * hidden]
        i = gates[:, 1 * hidden:2 * hidden]
        o = gates[:, 2 * hidden:3 * hidden]
        g = gates[:, 3 * hidden:4 * hidden]
        c1 = jax.nn.sigmoid(f) * c + jax.nn.sigmoid(i) * jnp.tanh(g)
        h1 = jax.nn.sigmoid(o) * jnp.tanh(c1)
        h_out_ref[k] = h1.astype(h_out_ref.dtype)   # contiguous (B, H) slab
        c_out_ref[k] = c1.astype(c_out_ref.dtype)
        return (h1, c1)

    # Register-carried h/c: scratch is read once at block entry and written
    # once at block exit; modest unroll bounds live ranges while keeping
    # LLO scheduling visibility.
    h_f, c_f = lax.fori_loop(0, t_blk, body, (h_sc[...], c_sc[...]),
                             unroll=unroll)
    h_sc[...] = h_f
    c_sc[...] = c_f


def _choose_time_block(seq_len, batch_blk, hidden, *, gx_bytes, out_bytes,
                       budget_bytes=40 << 20, max_blk=256):
    """Largest time block whose pipelined VMEM footprint fits the budget."""
    fixed = (hidden * 4 * hidden * 2          # resident bf16 W_hh
             + 2 * batch_blk * hidden * 4)    # f32 h/c carry scratch
    per_t = (2 * batch_blk * 4 * hidden * gx_bytes        # gx, double-buffered
             + 2 * 2 * batch_blk * hidden * out_bytes)    # h,c out, double-buf
    avail = max(budget_bytes - fixed, per_t * 8)
    max_t = min(max(8, int(avail // per_t)), max_blk)
    if seq_len <= max_t:
        return seq_len                        # block == full dim, always legal
    return max(8, (max_t // 8) * 8)


@partial(jax.jit, static_argnames=("batch_first", "time_block", "batch_block"))
def lstm_forward(x, weight_ih, weight_hh, bias, *, batch_first=True,
                 time_block=None, batch_block=None):
    """Pallas LSTM forward.

    x:         [batch, seq, input] if batch_first else [seq, batch, input]
    weight_ih: [input, 4*hidden]
    weight_hh: [hidden, 4*hidden]
    bias:      [4*hidden]

    Returns (h_n, c_n), each [batch, seq, hidden] (batch_first) or
    [seq, batch, hidden] otherwise — matching the PyTorch module.
    """
    # Internal layout is time-major (S, B, ...).
    if batch_first:
        x = jnp.transpose(x, (1, 0, 2))
    seq_len, batch, input_size = x.shape
    hidden = weight_hh.shape[0]
    assert weight_ih.shape == (input_size, 4 * hidden)
    assert weight_hh.shape == (hidden, 4 * hidden)
    assert bias.shape == (4 * hidden,)

    f32, bf16 = jnp.float32, jnp.bfloat16
    w_ih = weight_ih.astype(f32)
    w_hh = weight_hh.astype(bf16)              # bf16 MXU operand (resident)
    b = bias.astype(f32)

    # --- Hoisted input projection + folded bias (one big parallel matmul),
    #     computed in f32, streamed into the kernel as bf16. ---
    gates_x = (x.reshape(seq_len * batch, input_size).astype(f32) @ w_ih
               + b[None, :])
    gates_x = gates_x.reshape(seq_len, batch, 4 * hidden).astype(bf16)

    # --- Batch blocking (v7x: pass batch_block=batch//2 to use both TCs) ---
    b_blk = batch if batch_block is None else batch_block
    assert batch % b_blk == 0 and (b_blk == batch or b_blk % 8 == 0), \
        "batch_block must divide batch and be a multiple of 8 (or == batch)"
    n_b = batch // b_blk

    out_dtype = x.dtype
    out_bytes = jnp.dtype(out_dtype).itemsize

    # --- Time blocking (amortize per-grid-step overhead, VMEM-budget aware) ---
    t_blk = (time_block if time_block is not None
             else _choose_time_block(seq_len, b_blk, hidden,
                                     gx_bytes=2, out_bytes=out_bytes))
    n_t = pl.cdiv(seq_len, t_blk)
    s_pad = n_t * t_blk
    if s_pad != seq_len:
        gates_x = jnp.pad(gates_x, ((0, s_pad - seq_len), (0, 0), (0, 0)))

    # Explicit VMEM limit derived from the actual footprint (safe on v7x's
    # 64 MiB as well as v5e/v6e's 128 MiB).
    fixed = hidden * 4 * hidden * 2 + 2 * b_blk * hidden * 4
    per_t = 2 * b_blk * 4 * hidden * 2 + 2 * 2 * b_blk * hidden * out_bytes
    needed = fixed + per_t * t_blk
    vmem_limit = int(min(needed + needed // 4 + (8 << 20), 60 << 20))
    vmem_limit = max(vmem_limit, 16 << 20)

    kernel = partial(_lstm_kernel, unroll=min(t_blk, 8))

    grid_spec = pltpu.PrefetchScalarGridSpec(
        num_scalar_prefetch=0,
        grid=(n_b, n_t),                       # (batch blocks, time blocks)
        in_specs=[
            # one time block of precomputed input gates per grid iteration
            pl.BlockSpec((t_blk, b_blk, 4 * hidden), lambda bb, tt: (tt, bb, 0)),
            # recurrent weights stay in HBM; copied once into VMEM scratch
            pl.BlockSpec(memory_space=pl.ANY),
        ],
        out_specs=[
            pl.BlockSpec((t_blk, b_blk, hidden), lambda bb, tt: (tt, bb, 0)),
            pl.BlockSpec((t_blk, b_blk, hidden), lambda bb, tt: (tt, bb, 0)),
        ],
        scratch_shapes=[
            pltpu.VMEM((hidden, 4 * hidden), bf16),  # resident bf16 W_hh
            pltpu.VMEM((b_blk, hidden), f32),        # h carry
            pltpu.VMEM((b_blk, hidden), f32),        # c carry
            pltpu.SemaphoreType.DMA(()),             # W_hh copy semaphore
        ],
    )

    h_pad, c_pad = pl.pallas_call(
        kernel,
        out_shape=(jax.ShapeDtypeStruct((s_pad, batch, hidden), out_dtype),
                   jax.ShapeDtypeStruct((s_pad, batch, hidden), out_dtype)),
        grid_spec=grid_spec,
        compiler_params=pltpu.CompilerParams(
            # batch blocks are independent; time recurrence stays sequential
            dimension_semantics=("parallel", "arbitrary"),
            vmem_limit_bytes=vmem_limit,
        ),
    )(gates_x, w_hh)

    h_n = h_pad[:seq_len]
    c_n = c_pad[:seq_len]
    if batch_first:
        h_n = jnp.transpose(h_n, (1, 0, 2))
        c_n = jnp.transpose(c_n, (1, 0, 2))
    return h_n, c_n


def init_lstm_params(input_size, hidden_size, initial_forget_bias=0, seed=0):
    """Deterministic params mirroring LSTM.reset_parameters()."""
    key = jax.random.PRNGKey(seed)
    # orthogonal init for weight_ih
    a = jax.random.normal(key, (4 * hidden_size, input_size), dtype=jnp.float32)
    q, _ = jnp.linalg.qr(a)                       # (4H, input) orthonormal cols
    weight_ih = q.T.astype(jnp.float32)           # (input, 4H)
    # weight_hh = eye(H).repeat(1, 4) -> (H, 4H)
    weight_hh = jnp.tile(jnp.eye(hidden_size, dtype=jnp.float32), (1, 4))
    bias = jnp.zeros((4 * hidden_size,), dtype=jnp.float32)
    if initial_forget_bias != 0:
        bias = bias.at[:hidden_size].set(float(initial_forget_bias))
    return weight_ih, weight_hh, bias


def lstm_reference(x, weight_ih, weight_hh, bias, *, batch_first=True):
    """Pure-JAX f32 reference reproducing the PyTorch forward exactly."""
    if batch_first:
        x = jnp.transpose(x, (1, 0, 2))
    seq_len, batch, _ = x.shape
    hidden = weight_hh.shape[0]
    h0 = jnp.zeros((batch, hidden), jnp.float32)
    c0 = jnp.zeros((batch, hidden), jnp.float32)

    def step(carry, x_t):
        h, c = carry
        gates = bias[None, :] + h @ weight_hh + x_t @ weight_ih
        f, i, o, g = jnp.split(gates, 4, axis=1)
        c1 = jax.nn.sigmoid(f) * c + jax.nn.sigmoid(i) * jnp.tanh(g)
        h1 = jax.nn.sigmoid(o) * jnp.tanh(c1)
        return (h1, c1), (h1, c1)

    _, (h_n, c_n) = jax.lax.scan(step, (h0, c0), x)
    if batch_first:
        h_n = jnp.transpose(h_n, (1, 0, 2))
        c_n = jnp.transpose(c_n, (1, 0, 2))
    return h_n, c_n


if __name__ == "__main__":
    batch, seq, input_size, hidden = 2, 8, 4, 32

    key = jax.random.PRNGKey(0)
    x = jax.random.normal(key, (batch, seq, input_size), dtype=jnp.float32)

    weight_ih, weight_hh, bias = init_lstm_params(
        input_size, hidden, initial_forget_bias=3, seed=0)

    h_n, c_n = lstm_forward(x, weight_ih, weight_hh, bias, batch_first=True)
    jax.block_until_ready((h_n, c_n))

    h_ref, c_ref = lstm_reference(x, weight_ih, weight_hh, bias, batch_first=True)
    # bf16 MXU operands + bf16 gates_x streaming (f32 accumulation / state):
    # parity with the f32 reference loosens to ~1e-2 relative error.
    np.testing.assert_allclose(np.asarray(h_n), np.asarray(h_ref),
                               rtol=2e-2, atol=2e-2)
    np.testing.assert_allclose(np.asarray(c_n), np.asarray(c_ref),
                               rtol=2e-2, atol=2e-2)

    assert h_n.shape == (batch, seq, hidden)
    assert c_n.shape == (batch, seq, hidden)
    print("KERNEL_OK")
</pallas_src>

<mosaic_0001>
module attributes {stable_mosaic.version = 11 : i64} {
  func.func @_lstm_kernel(%arg0: i32, %arg1: i32, %arg2: memref<8x2x128xbf16, #tpu.memory_space<vmem>>, %arg3: memref<32x128xbf16, #tpu.memory_space<any>>, %arg4: memref<8x2x32xf32, #tpu.memory_space<vmem>>, %arg5: memref<8x2x32xf32, #tpu.memory_space<vmem>>, %arg6: memref<32x128xbf16, #tpu.memory_space<vmem>>, %arg7: memref<2x32xf32, #tpu.memory_space<vmem>>, %arg8: memref<2x32xf32, #tpu.memory_space<vmem>>, %arg9: memref<!tpu.dma_semaphore, #tpu.memory_space<semaphore_mem>>) attributes {dimension_semantics = [#tpu.dimension_semantics<parallel>, #tpu.dimension_semantics<arbitrary>], iteration_bounds = array<i64: 1, 1>, scalar_prefetch = 0 : i64, scratch_operands = 4 : i64, tpu.core_type = #tpu.core_type<tc>, window_params = [{transform_indices = @transform_0, window_bounds = array<i64: 8, 2, 128>}, {}, {transform_indices = @transform_2, window_bounds = array<i64: 8, 2, 32>}, {transform_indices = @transform_3, window_bounds = array<i64: 8, 2, 32>}]} {
    %c0_i32 = arith.constant 0 : i32
    %0 = arith.cmpi eq, %arg1, %c0_i32 : i32
    %1 = arith.extui %0 : i1 to i32
    %c0_i32_0 = arith.constant 0 : i32
    %2 = arith.cmpi ne, %1, %c0_i32_0 : i32
    scf.if %2 {
      tpu.enqueue_dma source(%arg3 : memref<32x128xbf16, #tpu.memory_space<any>>) target(%arg6 : memref<32x128xbf16, #tpu.memory_space<vmem>>) target_semaphore(%arg9 : memref<!tpu.dma_semaphore, #tpu.memory_space<semaphore_mem>>)
      tpu.wait_dma2 semaphore(%arg9 : memref<!tpu.dma_semaphore, #tpu.memory_space<semaphore_mem>>) src(%arg3 : memref<32x128xbf16, #tpu.memory_space<any>>) dst(%arg6 : memref<32x128xbf16, #tpu.memory_space<vmem>>)
      %cst_90 = arith.constant 0.000000e+00 : f32
      %328 = vector.broadcast %cst_90 : f32 to vector<2x32xf32>
      %c0_91 = arith.constant 0 : index
      %c0_92 = arith.constant 0 : index
      %329 = vector.load %arg7[%c0_91, %c0_92] : memref<2x32xf32, #tpu.memory_space<vmem>>, vector<2x32xf32>
      tpu.vector_store %arg7[%c0_91, %c0_92], %328 {strides = array<i32>} : memref<2x32xf32, #tpu.memory_space<vmem>>, vector<2x32xf32>,
      %cst_93 = arith.constant 0.000000e+00 : f32
      %330 = vector.broadcast %cst_93 : f32 to vector<2x32xf32>
      %c0_94 = arith.constant 0 : index
      %c0_95 = arith.constant 0 : index
      %331 = vector.load %arg8[%c0_94, %c0_95] : memref<2x32xf32, #tpu.memory_space<vmem>>, vector<2x32xf32>
      tpu.vector_store %arg8[%c0_94, %c0_95], %330 {strides = array<i32>} : memref<2x32xf32, #tpu.memory_space<vmem>>, vector<2x32xf32>,
    } else {
    }
    %c0 = arith.constant 0 : index
    %c0_1 = arith.constant 0 : index
    %3 = vector.load %arg6[%c0, %c0_1] : memref<32x128xbf16, #tpu.memory_space<vmem>>, vector<32x128xbf16>
    %c0_2 = arith.constant 0 : index
    %c0_3 = arith.constant 0 : index
    %4 = vector.load %arg7[%c0_2, %c0_3] : memref<2x32xf32, #tpu.memory_space<vmem>>, vector<2x32xf32>
    %c0_4 = arith.constant 0 : index
    %c0_5 = arith.constant 0 : index
    %5 = vector.load %arg8[%c0_4, %c0_5] : memref<2x32xf32, #tpu.memory_space<vmem>>, vector<2x32xf32>
    %c0_i32_6 = arith.constant 0 : i32
    %6 = arith.index_cast %c0_i32_6 : i32 to index
    %c0_7 = arith.constant 0 : index
    %c0_8 = arith.constant 0 : index
    %7 = vector.load %arg2[%6, %c0_7, %c0_8] : memref<8x2x128xbf16, #tpu.memory_space<vmem>>, vector<1x2x128xbf16>
    %8 = vector.shape_cast %7 : vector<1x2x128xbf16> to vector<2x128xbf16>
    %9 = arith.extf %8 : vector<2x128xbf16> to vector<2x128xf32>
    %10 = arith.truncf %4 : vector<2x32xf32> to vector<2x32xbf16>
    %cst = arith.constant dense<0.000000e+00> : vector<2x128xf32>
    %11 = tpu.matmul %10, %3, %cst {dimension_numbers = #tpu.dot_dimension_numbers<[1], [0], [0], [1], [0, 0, 1, 1], [], []>} : vector<2x32xbf16>, vector<32x128xbf16>, vector<2x128xf32> -> vector<2x128xf32>
    %12 = arith.addf %9, %11 : vector<2x128xf32>
    %13 = vector.extract_strided_slice %12 {offsets = [0, 0], sizes = [2, 32], strides = [1, 1]} : vector<2x128xf32> to vector<2x32xf32>
    %14 = vector.extract_strided_slice %12 {offsets = [0, 32], sizes = [2, 32], strides = [1, 1]} : vector<2x128xf32> to vector<2x32xf32>
    %15 = vector.extract_strided_slice %12 {offsets = [0, 64], sizes = [2, 32], strides = [1, 1]} : vector<2x128xf32> to vector<2x32xf32>
    %16 = vector.extract_strided_slice %12 {offsets = [0, 96], sizes = [2, 32], strides = [1, 1]} : vector<2x128xf32> to vector<2x32xf32>
    %17 = arith.negf %13 : vector<2x32xf32>
    %18 = math.exp %17 : vector<2x32xf32>
    %cst_9 = arith.constant 1.000000e+00 : f32
    %19 = vector.broadcast %cst_9 : f32 to vector<2x32xf32>
    %20 = arith.addf %19, %18 : vector<2x32xf32>
    %21 = arith.divf %19, %20 : vector<2x32xf32>
    %22 = arith.mulf %21, %5 : vector<2x32xf32>
    %23 = arith.negf %14 : vector<2x32xf32>
    %24 = math.exp %23 : vector<2x32xf32>
    %cst_10 = arith.constant 1.000000e+00 : f32
    %25 = vector.broadcast %cst_10 : f32 to vector<2x32xf32>
    %26 = arith.addf %25, %24 : vector<2x32xf32>
    %27 = arith.divf %25, %26 : vector<2x32xf32>
    %28 = math.tanh %16 : vector<2x32xf32>
    %29 = arith.mulf %27, %28 : vector<2x32xf32>
    %30 = arith.addf %22, %29 : vector<2x32xf32>
    %31 = arith.negf %15 : vector<2x32xf32>
    %32 = math.exp %31 : vector<2x32xf32>
    %cst_11 = arith.constant 1.000000e+00 : f32
    %33 = vector.broadcast %cst_11 : f32 to vector<2x32xf32>
    %34 = arith.addf %33, %32 : vector<2x32xf32>
    %35 = arith.divf %33, %34 : vector<2x32xf32>
    %36 = math.tanh %30 : vector<2x32xf32>
    %37 = arith.mulf %35, %36 : vector<2x32xf32>
    %38 = arith.index_cast %c0_i32_6 : i32 to index
    %c0_12 = arith.constant 0 : index
    %c0_13 = arith.constant 0 : index
    %39 = vector.load %arg4[%38, %c0_12, %c0_13] : memref<8x2x32xf32, #tpu.memory_space<vmem>>, vector<1x2x32xf32>
    %40 = vector.shape_cast %39 : vector<1x2x32xf32> to vector<2x32xf32>
    %41 = vector.shape_cast %37 : vector<2x32xf32> to vector<1x2x32xf32>
    tpu.vector_store %arg4[%38, %c0_12, %c0_13], %41 {strides = array<i32>} : memref<8x2x32xf32, #tpu.memory_space<vmem>>, vector<1x2x32xf32>,
    %42 = arith.index_cast %c0_i32_6 : i32 to index
    %c0_14 = arith.constant 0 : index
    %c0_15 = arith.constant 0 : index
    %43 = vector.load %arg5[%42, %c0_14, %c0_15] : memref<8x2x32xf32, #tpu.memory_space<vmem>>, vector<1x2x32xf32>
    %44 = vector.shape_cast %43 : vector<1x2x32xf32> to vector<2x32xf32>
    %45 = vector.shape_cast %30 : vector<2x32xf32> to vector<1x2x32xf32>
    tpu.vector_store %arg5[%42, %c0_14, %c0_15], %45 {strides = array<i32>} : memref<8x2x32xf32, #tpu.memory_space<vmem>>, vector<1x2x32xf32>,
    %c1_i32 = arith.constant 1 : i32
    %46 = arith.index_cast %c1_i32 : i32 to index
    %c0_16 = arith.constant 0 : index
    %c0_17 = arith.constant 0 : index
    %47 = vector.load %arg2[%46, %c0_16, %c0_17] : memref<8x2x128xbf16, #tpu.memory_space<vmem>>, vector<1x2x128xbf16>
    %48 = vector.shape_cast %47 : vector<1x2x128xbf16> to vector<2x128xbf16>
    %49 = arith.extf %48 : vector<2x128xbf16> to vector<2x128xf32>
    %50 = arith.truncf %37 : vector<2x32xf32> to vector<2x32xbf16>
    %cst_18 = arith.constant dense<0.000000e+00> : vector<2x128xf32>
    %51 = tpu.matmul %50, %3, %cst_18 {dimension_numbers = #tpu.dot_dimension_numbers<[1], [0], [0], [1], [0, 0, 1, 1], [], []>} : vector<2x32xbf16>, vector<32x128xbf16>, vector<2x128xf32> -> vector<2x128xf32>
    %52 = arith.addf %49, %51 : vector<2x128xf32>
    %53 = vector.extract_strided_slice %52 {offsets = [0, 0], sizes = [2, 32], strides = [1, 1]} : vector<2x128xf32> to vector<2x32xf32>
    %54 = vector.extract_strided_slice %52 {offsets = [0, 32], sizes = [2, 32], strides = [1, 1]} : vector<2x128xf32> to vector<2x32xf32>
    %55 = vector.extract_strided_slice %52 {offsets = [0, 64], sizes = [2, 32], strides = [1, 1]} : vector<2x128xf32> to vector<2x32xf32>
    %56 = vector.extract_strided_slice %52 {offsets = [0, 96], sizes = [2, 32], strides = [1, 1]} : vector<2x128xf32> to vector<2x32xf32>
    %57 = arith.negf %53 : vector<2x32xf32>
    %58 = math.exp %57 : vector<2x32xf32>
    %cst_19 = arith.constant 1.000000e+00 : f32
    %59 = vector.broadcast %cst_19 : f32 to vector<2x32xf32>
    %60 = arith.addf %59, %58 : vector<2x32xf32>
    %61 = arith.divf %59, %60 : vector<2x32xf32>
    %62 = arith.mulf %61, %30 : vector<2x32xf32>
    %63 = arith.negf %54 : vector<2x32xf32>
    %64 = math.exp %63 : vector<2x32xf32>
    %cst_20 = arith.constant 1.000000e+00 : f32
    %65 = vector.broadcast %cst_20 : f32 to vector<2x32xf32>
    %66 = arith.addf %65, %64 : vector<2x32xf32>
    %67 = arith.divf %65, %66 : vector<2x32xf32>
    %68 = math.tanh %56 : vector<2x32xf32>
    %69 = arith.mulf %67, %68 : vector<2x32xf32>
    %70 = arith.addf %62, %69 : vector<2x32xf32>
    %71 = arith.negf %55 : vector<2x32xf32>
    %72 = math.exp %71 : vector<2x32xf32>
    %cst_21 = arith.constant 1.000000e+00 : f32
    %73 = vector.broadcast %cst_21 : f32 to vector<2x32xf32>
    %74 = arith.addf %73, %72 : vector<2x32xf32>
    %75 = arith.divf %73, %74 : vector<2x32xf32>
    %76 = math.tanh %70 : vector<2x32xf32>
    %77 = arith.mulf %75, %76 : vector<2x32xf32>
    %78 = arith.index_cast %c1_i32 : i32 to index
    %c0_22 = arith.constant 0 : index
    %c0_23 = arith.constant 0 : index
    %79 = vector.load %arg4[%78, %c0_22, %c0_23] : memref<8x2x32xf32, #tpu.memory_space<vmem>>, vector<1x2x32xf32>
    %80 = vector.shape_cast %79 : vector<1x2x32xf32> to vector<2x32xf32>
    %81 = vector.shape_cast %77 : vector<2x32xf32> to vector<1x2x32xf32>
    tpu.vector_store %arg4[%78, %c0_22, %c0_23], %81 {strides = array<i32>} : memref<8x2x32xf32, #tpu.memory_space<vmem>>, vector<1x2x32xf32>,
    %82 = arith.index_cast %c1_i32 : i32 to index
    %c0_24 = arith.constant 0 : index
    %c0_25 = arith.constant 0 : index
    %83 = vector.load %arg5[%82, %c0_24, %c0_25] : memref<8x2x32xf32, #tpu.memory_space<vmem>>, vector<1x2x32xf32>
    %84 = vector.shape_cast %83 : vector<1x2x32xf32> to vector<2x32xf32>
    %85 = vector.shape_cast %70 : vector<2x32xf32> to vector<1x2x32xf32>
    tpu.vector_store %arg5[%82, %c0_24, %c0_25], %85 {strides = array<i32>} : memref<8x2x32xf32, #tpu.memory_space<vmem>>, vector<1x2x32xf32>,
    %c2_i32 = arith.constant 2 : i32
    %86 = arith.index_cast %c2_i32 : i32 to index
    %c0_26 = arith.constant 0 : index
    %c0_27 = arith.constant 0 : index
    %87 = vector.load %arg2[%86, %c0_26, %c0_27] : memref<8x2x128xbf16, #tpu.memory_space<vmem>>, vector<1x2x128xbf16>
    %88 = vector.shape_cast %87 : vector<1x2x128xbf16> to vector<2x128xbf16>
    %89 = arith.extf %88 : vector<2x128xbf16> to vector<2x128xf32>
    %90 = arith.truncf %77 : vector<2x32xf32> to vector<2x32xbf16>
    %cst_28 = arith.constant dense<0.000000e+00> : vector<2x128xf32>
    %91 = tpu.matmul %90, %3, %cst_28 {dimension_numbers = #tpu.dot_dimension_numbers<[1], [0], [0], [1], [0, 0, 1, 1], [], []>} : vector<2x32xbf16>, vector<32x128xbf16>, vector<2x128xf32> -> vector<2x128xf32>
    %92 = arith.addf %89, %91 : vector<2x128xf32>
    %93 = vector.extract_strided_slice %92 {offsets = [0, 0], sizes = [2, 32], strides = [1, 1]} : vector<2x128xf32> to vector<2x32xf32>
    %94 = vector.extract_strided_slice %92 {offsets = [0, 32], sizes = [2, 32], strides = [1, 1]} : vector<2x128xf32> to vector<2x32xf32>
    %95 = vector.extract_strided_slice %92 {offsets = [0, 64], sizes = [2, 32], strides = [1, 1]} : vector<2x128xf32> to vector<2x32xf32>
    %96 = vector.extract_strided_slice %92 {offsets = [0, 96], sizes = [2, 32], strides = [1, 1]} : vector<2x128xf32> to vector<2x32xf32>
    %97 = arith.negf %93 : vector<2x32xf32>
    %98 = math.exp %97 : vector<2x32xf32>
    %cst_29 = arith.constant 1.000000e+00 : f32
    %99 = vector.broadcast %cst_29 : f32 to vector<2x32xf32>
    %100 = arith.addf %99, %98 : vector<2x32xf32>
    %101 = arith.divf %99, %100 : vector<2x32xf32>
    %102 = arith.mulf %101, %70 : vector<2x32xf32>
    %103 = arith.negf %94 : vector<2x32xf32>
    %104 = math.exp %103 : vector<2x32xf32>
    %cst_30 = arith.constant 1.000000e+00 : f32
    %105 = vector.broadcast %cst_30 : f32 to vector<2x32xf32>
    %106 = arith.addf %105, %104 : vector<2x32xf32>
    %107 = arith.divf %105, %106 : vector<2x32xf32>
    %108 = math.tanh %96 : vector<2x32xf32>
    %109 = arith.mulf %107, %108 : vector<2x32xf32>
    %110 = arith.addf %102, %109 : vector<2x32xf32>
    %111 = arith.negf %95 : vector<2x32xf32>
    %112 = math.exp %111 : vector<2x32xf32>
    %cst_31 = arith.constant 1.000000e+00 : f32
    %113 = vector.broadcast %cst_31 : f32 to vector<2x32xf32>
    %114 = arith.addf %113, %112 : vector<2x32xf32>
    %115 = arith.divf %113, %114 : vector<2x32xf32>
    %116 = math.tanh %110 : vector<2x32xf32>
    %117 = arith.mulf %115, %116 : vector<2x32xf32>
    %118 = arith.index_cast %c2_i32 : i32 to index
    %c0_32 = arith.constant 0 : index
    %c0_33 = arith.constant 0 : index
    %119 = vector.load %arg4[%118, %c0_32, %c0_33] : memref<8x2x32xf32, #tpu.memory_space<vmem>>, vector<1x2x32xf32>
    %120 = vector.shape_cast %119 : vector<1x2x32xf32> to vector<2x32xf32>
    %121 = vector.shape_cast %117 : vector<2x32xf32> to vector<1x2x32xf32>
    tpu.vector_store %arg4[%118, %c0_32, %c0_33], %121 {strides = array<i32>} : memref<8x2x32xf32, #tpu.memory_space<vmem>>, vector<1x2x32xf32>,
    %122 = arith.index_cast %c2_i32 : i32 to index
    %c0_34 = arith.constant 0 : index
    %c0_35 = arith.constant 0 : index
    %123 = vector.load %arg5[%122, %c0_34, %c0_35] : memref<8x2x32xf32, #tpu.memory_space<vmem>>, vector<1x2x32xf32>
    %124 = vector.shape_cast %123 : vector<1x2x32xf32> to vector<2x32xf32>
    %125 = vector.shape_cast %110 : vector<2x32xf32> to vector<1x2x32xf32>
    tpu.vector_store %arg5[%122, %c0_34, %c0_35], %125 {strides = array<i32>} : memref<8x2x32xf32, #tpu.memory_space<vmem>>, vector<1x2x32xf32>,
    %c3_i32 = arith.constant 3 : i32
    %126 = arith.index_cast %c3_i32 : i32 to index
    %c0_36 = arith.constant 0 : index
    %c0_37 = arith.constant 0 : index
    %127 = vector.load %arg2[%126, %c0_36, %c0_37] : memref<8x2x128xbf16, #tpu.memory_space<vmem>>, vector<1x2x128xbf16>
    %128 = vector.shape_cast %127 : vector<1x2x128xbf16> to vector<2x128xbf16>
    %129 = arith.extf %128 : vector<2x128xbf16> to vector<2x128xf32>
    %130 = arith.truncf %117 : vector<2x32xf32> to vector<2x32xbf16>
    %cst_38 = arith.constant dense<0.000000e+00> : vector<2x128xf32>
    %131 = tpu.matmul %130, %3, %cst_38 {dimension_numbers = #tpu.dot_dimension_numbers<[1], [0], [0], [1], [0, 0, 1, 1], [], []>} : vector<2x32xbf16>, vector<32x128xbf16>, vector<2x128xf32> -> vector<2x128xf32>
    %132 = arith.addf %129, %131 : vector<2x128xf32>
    %133 = vector.extract_strided_slice %132 {offsets = [0, 0], sizes = [2, 32], strides = [1, 1]} : vector<2x128xf32> to vector<2x32xf32>
    %134 = vector.extract_strided_slice %132 {offsets = [0, 32], sizes = [2, 32], strides = [1, 1]} : vector<2x128xf32> to vector<2x32xf32>
    %135 = vector.extract_strided_slice %132 {offsets = [0, 64], sizes = [2, 32], strides = [1, 1]} : vector<2x128xf32> to vector<2x32xf32>
    %136 = vector.extract_strided_slice %132 {offsets = [0, 96], sizes = [2, 32], strides = [1, 1]} : vector<2x128xf32> to vector<2x32xf32>
    %137 = arith.negf %133 : vector<2x32xf32>
    %138 = math.exp %137 : vector<2x32xf32>
    %cst_39 = arith.constant 1.000000e+00 : f32
    %139 = vector.broadcast %cst_39 : f32 to vector<2x32xf32>
    %140 = arith.addf %139, %138 : vector<2x32xf32>
    %141 = arith.divf %139, %140 : vector<2x32xf32>
    %142 = arith.mulf %141, %110 : vector<2x32xf32>
    %143 = arith.negf %134 : vector<2x32xf32>
    %144 = math.exp %143 : vector<2x32xf32>
    %cst_40 = arith.constant 1.000000e+00 : f32
    %145 = vector.broadcast %cst_40 : f32 to vector<2x32xf32>
    %146 = arith.addf %145, %144 : vector<2x32xf32>
    %147 = arith.divf %145, %146 : vector<2x32xf32>
    %148 = math.tanh %136 : vector<2x32xf32>
    %149 = arith.mulf %147, %148 : vector<2x32xf32>
    %150 = arith.addf %142, %149 : vector<2x32xf32>
    %151 = arith.negf %135 : vector<2x32xf32>
    %152 = math.exp %151 : vector<2x32xf32>
    %cst_41 = arith.constant 1.000000e+00 : f32
    %153 = vector.broadcast %cst_41 : f32 to vector<2x32xf32>
    %154 = arith.addf %153, %152 : vector<2x32xf32>
    %155 = arith.divf %153, %154 : vector<2x32xf32>
    %156 = math.tanh %150 : vector<2x32xf32>
    %157 = arith.mulf %155, %156 : vector<2x32xf32>
    %158 = arith.index_cast %c3_i32 : i32 to index
    %c0_42 = arith.constant 0 : index
    %c0_43 = arith.constant 0 : index
    %159 = vector.load %arg4[%158, %c0_42, %c0_43] : memref<8x2x32xf32, #tpu.memory_space<vmem>>, vector<1x2x32xf32>
    %160 = vector.shape_cast %159 : vector<1x2x32xf32> to vector<2x32xf32>
    %161 = vector.shape_cast %157 : vector<2x32xf32> to vector<1x2x32xf32>
    tpu.vector_store %arg4[%158, %c0_42, %c0_43], %161 {strides = array<i32>} : memref<8x2x32xf32, #tpu.memory_space<vmem>>, vector<1x2x32xf32>,
    %162 = arith.index_cast %c3_i32 : i32 to index
    %c0_44 = arith.constant 0 : index
    %c0_45 = arith.constant 0 : index
    %163 = vector.load %arg5[%162, %c0_44, %c0_45] : memref<8x2x32xf32, #tpu.memory_space<vmem>>, vector<1x2x32xf32>
    %164 = vector.shape_cast %163 : vector<1x2x32xf32> to vector<2x32xf32>
    %165 = vector.shape_cast %150 : vector<2x32xf32> to vector<1x2x32xf32>
    tpu.vector_store %arg5[%162, %c0_44, %c0_45], %165 {strides = array<i32>} : memref<8x2x32xf32, #tpu.memory_space<vmem>>, vector<1x2x32xf32>,
    %c4_i32 = arith.constant 4 : i32
    %166 = arith.index_cast %c4_i32 : i32 to index
    %c0_46 = arith.constant 0 : index
    %c0_47 = arith.constant 0 : index
    %167 = vector.load %arg2[%166, %c0_46, %c0_47] : memref<8x2x128xbf16, #tpu.memory_space<vmem>>, vector<1x2x128xbf16>
    %168 = vector.shape_cast %167 : vector<1x2x128xbf16> to vector<2x128xbf16>
    %169 = arith.extf %168 : vector<2x128xbf16> to vector<2x128xf32>
    %170 = arith.truncf %157 : vector<2x32xf32> to vector<2x32xbf16>
    %cst_48 = arith.constant dense<0.000000e+00> : vector<2x128xf32>
    %171 = tpu.matmul %170, %3, %cst_48 {dimension_numbers = #tpu.dot_dimension_numbers<[1], [0], [0], [1], [0, 0, 1, 1], [], []>} : vector<2x32xbf16>, vector<32x128xbf16>, vector<2x128xf32> -> vector<2x128xf32>
    %172 = arith.addf %169, %171 : vector<2x128xf32>
    %173 = vector.extract_strided_slice %172 {offsets = [0, 0], sizes = [2, 32], strides = [1, 1]} : vector<2x128xf32> to vector<2x32xf32>
    %174 = vector.extract_strided_slice %172 {offsets = [0, 32], sizes = [2, 32], strides = [1, 1]} : vector<2x128xf32> to vector<2x32xf32>
    %175 = vector.extract_strided_slice %172 {offsets = [0, 64], sizes = [2, 32], strides = [1, 1]} : vector<2x128xf32> to vector<2x32xf32>
    %176 = vector.extract_strided_slice %172 {offsets = [0, 96], sizes = [2, 32], strides = [1, 1]} : vector<2x128xf32> to vector<2x32xf32>
    %177 = arith.negf %173 : vector<2x32xf32>
    %178 = math.exp %177 : vector<2x32xf32>
    %cst_49 = arith.constant 1.000000e+00 : f32
    %179 = vector.broadcast %cst_49 : f32 to vector<2x32xf32>
    %180 = arith.addf %179, %178 : vector<2x32xf32>
    %181 = arith.divf %179, %180 : vector<2x32xf32>
    %182 = arith.mulf %181, %150 : vector<2x32xf32>
    %183 = arith.negf %174 : vector<2x32xf32>
    %184 = math.exp %183 : vector<2x32xf32>
    %cst_50 = arith.constant 1.000000e+00 : f32
    %185 = vector.broadcast %cst_50 : f32 to vector<2x32xf32>
    %186 = arith.addf %185, %184 : vector<2x32xf32>
    %187 = arith.divf %185, %186 : vector<2x32xf32>
    %188 = math.tanh %176 : vector<2x32xf32>
    %189 = arith.mulf %187, %188 : vector<2x32xf32>
    %190 = arith.addf %182, %189 : vector<2x32xf32>
    %191 = arith.negf %175 : vector<2x32xf32>
    %192 = math.exp %191 : vector<2x32xf32>
    %cst_51 = arith.constant 1.000000e+00 : f32
    %193 = vector.broadcast %cst_51 : f32 to vector<2x32xf32>
    %194 = arith.addf %193, %192 : vector<2x32xf32>
    %195 = arith.divf %193, %194 : vector<2x32xf32>
    %196 = math.tanh %190 : vector<2x32xf32>
    %197 = arith.mulf %195, %196 : vector<2x32xf32>
    %198 = arith.index_cast %c4_i32 : i32 to index
    %c0_52 = arith.constant 0 : index
    %c0_53 = arith.constant 0 : index
    %199 = vector.load %arg4[%198, %c0_52, %c0_53] : memref<8x2x32xf32, #tpu.memory_space<vmem>>, vector<1x2x32xf32>
    %200 = vector.shape_cast %199 : vector<1x2x32xf32> to vector<2x32xf32>
    %201 = vector.shape_cast %197 : vector<2x32xf32> to vector<1x2x32xf32>
    tpu.vector_store %arg4[%198, %c0_52, %c0_53], %201 {strides = array<i32>} : memref<8x2x32xf32, #tpu.memory_space<vmem>>, vector<1x2x32xf32>,
    %202 = arith.index_cast %c4_i32 : i32 to index
    %c0_54 = arith.constant 0 : index
    %c0_55 = arith.constant 0 : index
    %203 = vector.load %arg5[%202, %c0_54, %c0_55] : memref<8x2x32xf32, #tpu.memory_space<vmem>>, vector<1x2x32xf32>
    %204 = vector.shape_cast %203 : vector<1x2x32xf32> to vector<2x32xf32>
    %205 = vector.shape_cast %190 : vector<2x32xf32> to vector<1x2x32xf32>
    tpu.vector_store %arg5[%202, %c0_54, %c0_55], %205 {strides = array<i32>} : memref<8x2x32xf32, #tpu.memory_space<vmem>>, vector<1x2x32xf32>,
    %c5_i32 = arith.constant 5 : i32
    %206 = arith.index_cast %c5_i32 : i32 to index
    %c0_56 = arith.constant 0 : index
    %c0_57 = arith.constant 0 : index
    %207 = vector.load %arg2[%206, %c0_56, %c0_57] : memref<8x2x128xbf16, #tpu.memory_space<vmem>>, vector<1x2x128xbf16>
    %208 = vector.shape_cast %207 : vector<1x2x128xbf16> to vector<2x128xbf16>
    %209 = arith.extf %208 : vector<2x128xbf16> to vector<2x128xf32>
    %210 = arith.truncf %197 : vector<2x32xf32> to vector<2x32xbf16>
    %cst_58 = arith.constant dense<0.000000e+00> : vector<2x128xf32>
    %211 = tpu.matmul %210, %3, %cst_58 {dimension_numbers = #tpu.dot_dimension_numbers<[1], [0], [0], [1], [0, 0, 1, 1], [], []>} : vector<2x32xbf16>, vector<32x128xbf16>, vector<2x128xf32> -> vector<2x128xf32>
    %212 = arith.addf %209, %211 : vector<2x128xf32>
    %213 = vector.extract_strided_slice %212 {offsets = [0, 0], sizes = [2, 32], strides = [1, 1]} : vector<2x128xf32> to vector<2x32xf32>
    %214 = vector.extract_strided_slice %212 {offsets = [0, 32], sizes = [2, 32], strides = [1, 1]} : vector<2x128xf32> to vector<2x32xf32>
    %215 = vector.extract_strided_slice %212 {offsets = [0, 64], sizes = [2, 32], strides = [1, 1]} : vector<2x128xf32> to vector<2x32xf32>
    %216 = vector.extract_strided_slice %212 {offsets = [0, 96], sizes = [2, 32], strides = [1, 1]} : vector<2x128xf32> to vector<2x32xf32>
    %217 = arith.negf %213 : vector<2x32xf32>
    %218 = math.exp %217 : vector<2x32xf32>
    %cst_59 = arith.constant 1.000000e+00 : f32
    %219 = vector.broadcast %cst_59 : f32 to vector<2x32xf32>
    %220 = arith.addf %219, %218 : vector<2x32xf32>
    %221 = arith.divf %219, %220 : vector<2x32xf32>
    %222 = arith.mulf %221, %190 : vector<2x32xf32>
    %223 = arith.negf %214 : vector<2x32xf32>
    %224 = math.exp %223 : vector<2x32xf32>
    %cst_60 = arith.constant 1.000000e+00 : f32
    %225 = vector.broadcast %cst_60 : f32 to vector<2x32xf32>
    %226 = arith.addf %225, %224 : vector<2x32xf32>
    %227 = arith.divf %225, %226 : vector<2x32xf32>
    %228 = math.tanh %216 : vector<2x32xf32>
    %229 = arith.mulf %227, %228 : vector<2x32xf32>
    %230 = arith.addf %222, %229 : vector<2x32xf32>
    %231 = arith.negf %215 : vector<2x32xf32>
    %232 = math.exp %231 : vector<2x32xf32>
    %cst_61 = arith.constant 1.000000e+00 : f32
    %233 = vector.broadcast %cst_61 : f32 to vector<2x32xf32>
    %234 = arith.addf %233, %232 : vector<2x32xf32>
    %235 = arith.divf %233, %234 : vector<2x32xf32>
    %236 = math.tanh %230 : vector<2x32xf32>
    %237 = arith.mulf %235, %236 : vector<2x32xf32>
    %238 = arith.index_cast %c5_i32 : i32 to index
    %c0_62 = arith.constant 0 : index
    %c0_63 = arith.constant 0 : index
    %239 = vector.load %arg4[%238, %c0_62, %c0_63] : memref<8x2x32xf32, #tpu.memory_space<vmem>>, vector<1x2x32xf32>
    %240 = vector.shape_cast %239 : vector<1x2x32xf32> to vector<2x32xf32>
    %241 = vector.shape_cast %237 : vector<2x32xf32> to vector<1x2x32xf32>
    tpu.vector_store %arg4[%238, %c0_62, %c0_63], %241 {strides = array<i32>} : memref<8x2x32xf32, #tpu.memory_space<vmem>>, vector<1x2x32xf32>,
    %242 = arith.index_cast %c5_i32 : i32 to index
    %c0_64 = arith.constant 0 : index
    %c0_65 = arith.constant 0 : index
    %243 = vector.load %arg5[%242, %c0_64, %c0_65] : memref<8x2x32xf32, #tpu.memory_space<vmem>>, vector<1x2x32xf32>
    %244 = vector.shape_cast %243 : vector<1x2x32xf32> to vector<2x32xf32>
    %245 = vector.shape_cast %230 : vector<2x32xf32> to vector<1x2x32xf32>
    tpu.vector_store %arg5[%242, %c0_64, %c0_65], %245 {strides = array<i32>} : memref<8x2x32xf32, #tpu.memory_space<vmem>>, vector<1x2x32xf32>,
    %c6_i32 = arith.constant 6 : i32
    %246 = arith.index_cast %c6_i32 : i32 to index
    %c0_66 = arith.constant 0 : index
    %c0_67 = arith.constant 0 : index
    %247 = vector.load %arg2[%246, %c0_66, %c0_67] : memref<8x2x128xbf16, #tpu.memory_space<vmem>>, vector<1x2x128xbf16>
    %248 = vector.shape_cast %247 : vector<1x2x128xbf16> to vector<2x128xbf16>
    %249 = arith.extf %248 : vector<2x128xbf16> to vector<2x128xf32>
    %250 = arith.truncf %237 : vector<2x32xf32> to vector<2x32xbf16>
    %cst_68 = arith.constant dense<0.000000e+00> : vector<2x128xf32>
    %251 = tpu.matmul %250, %3, %cst_68 {dimension_numbers = #tpu.dot_dimension_numbers<[1], [0], [0], [1], [0, 0, 1, 1], [], []>} : vector<2x32xbf16>, vector<32x128xbf16>, vector<2x128xf32> -> vector<2x128xf32>
    %252 = arith.addf %249, %251 : vector<2x128xf32>
    %253 = vector.extract_strided_slice %252 {offsets = [0, 0], sizes = [2, 32], strides = [1, 1]} : vector<2x128xf32> to vector<2x32xf32>
    %254 = vector.extract_strided_slice %252 {offsets = [0, 32], sizes = [2, 32], strides = [1, 1]} : vector<2x128xf32> to vector<2x32xf32>
    %255 = vector.extract_strided_slice %252 {offsets = [0, 64], sizes = [2, 32], strides = [1, 1]} : vector<2x128xf32> to vector<2x32xf32>
    %256 = vector.extract_strided_slice %252 {offsets = [0, 96], sizes = [2, 32], strides = [1, 1]} : vector<2x128xf32> to vector<2x32xf32>
    %257 = arith.negf %253 : vector<2x32xf32>
    %258 = math.exp %257 : vector<2x32xf32>
    %cst_69 = arith.constant 1.000000e+00 : f32
    %259 = vector.broadcast %cst_69 : f32 to vector<2x32xf32>
    %260 = arith.addf %259, %258 : vector<2x32xf32>
    %261 = arith.divf %259, %260 : vector<2x32xf32>
    %262 = arith.mulf %261, %230 : vector<2x32xf32>
    %263 = arith.negf %254 : vector<2x32xf32>
    %264 = math.exp %263 : vector<2x32xf32>
    %cst_70 = arith.constant 1.000000e+00 : f32
    %265 = vector.broadcast %cst_70 : f32 to vector<2x32xf32>
    %266 = arith.addf %265, %264 : vector<2x32xf32>
    %267 = arith.divf %265, %266 : vector<2x32xf32>
    %268 = math.tanh %256 : vector<2x32xf32>
    %269 = arith.mulf %267, %268 : vector<2x32xf32>
    %270 = arith.addf %262, %269 : vector<2x32xf32>
    %271 = arith.negf %255 : vector<2x32xf32>
    %272 = math.exp %271 : vector<2x32xf32>
    %cst_71 = arith.constant 1.000000e+00 : f32
    %273 = vector.broadcast %cst_71 : f32 to vector<2x32xf32>
    %274 = arith.addf %273, %272 : vector<2x32xf32>
    %275 = arith.divf %273, %274 : vector<2x32xf32>
    %276 = math.tanh %270 : vector<2x32xf32>
    %277 = arith.mulf %275, %276 : vector<2x32xf32>
    %278 = arith.index_cast %c6_i32 : i32 to index
    %c0_72 = arith.constant 0 : index
    %c0_73 = arith.constant 0 : index
    %279 = vector.load %arg4[%278, %c0_72, %c0_73] : memref<8x2x32xf32, #tpu.memory_space<vmem>>, vector<1x2x32xf32>
    %280 = vector.shape_cast %279 : vector<1x2x32xf32> to vector<2x32xf32>
    %281 = vector.shape_cast %277 : vector<2x32xf32> to vector<1x2x32xf32>
    tpu.vector_store %arg4[%278, %c0_72, %c0_73], %281 {strides = array<i32>} : memref<8x2x32xf32, #tpu.memory_space<vmem>>, vector<1x2x32xf32>,
    %282 = arith.index_cast %c6_i32 : i32 to index
    %c0_74 = arith.constant 0 : index
    %c0_75 = arith.constant 0 : index
    %283 = vector.load %arg5[%282, %c0_74, %c0_75] : memref<8x2x32xf32, #tpu.memory_space<vmem>>, vector<1x2x32xf32>
    %284 = vector.shape_cast %283 : vector<1x2x32xf32> to vector<2x32xf32>
    %285 = vector.shape_cast %270 : vector<2x32xf32> to vector<1x2x32xf32>
    tpu.vector_store %arg5[%282, %c0_74, %c0_75], %285 {strides = array<i32>} : memref<8x2x32xf32, #tpu.memory_space<vmem>>, vector<1x2x32xf32>,
    %c7_i32 = arith.constant 7 : i32
    %286 = arith.index_cast %c7_i32 : i32 to index
    %c0_76 = arith.constant 0 : index
    %c0_77 = arith.constant 0 : index
    %287 = vector.load %arg2[%286, %c0_76, %c0_77] : memref<8x2x128xbf16, #tpu.memory_space<vmem>>, vector<1x2x128xbf16>
    %288 = vector.shape_cast %287 : vector<1x2x128xbf16> to vector<2x128xbf16>
    %289 = arith.extf %288 : vector<2x128xbf16> to vector<2x128xf32>
    %290 = arith.truncf %277 : vector<2x32xf32> to vector<2x32xbf16>
    %cst_78 = arith.constant dense<0.000000e+00> : vector<2x128xf32>
    %291 = tpu.matmul %290, %3, %cst_78 {dimension_numbers = #tpu.dot_dimension_numbers<[1], [0], [0], [1], [0, 0, 1, 1], [], []>} : vector<2x32xbf16>, vector<32x128xbf16>, vector<2x128xf32> -> vector<2x128xf32>
    %292 = arith.addf %289, %291 : vector<2x128xf32>
    %293 = vector.extract_strided_slice %292 {offsets = [0, 0], sizes = [2, 32], strides = [1, 1]} : vector<2x128xf32> to vector<2x32xf32>
    %294 = vector.extract_strided_slice %292 {offsets = [0, 32], sizes = [2, 32], strides = [1, 1]} : vector<2x128xf32> to vector<2x32xf32>
    %295 = vector.extract_strided_slice %292 {offsets = [0, 64], sizes = [2, 32], strides = [1, 1]} : vector<2x128xf32> to vector<2x32xf32>
    %296 = vector.extract_strided_slice %292 {offsets = [0, 96], sizes = [2, 32], strides = [1, 1]} : vector<2x128xf32> to vector<2x32xf32>
    %297 = arith.negf %293 : vector<2x32xf32>
    %298 = math.exp %297 : vector<2x32xf32>
    %cst_79 = arith.constant 1.000000e+00 : f32
    %299 = vector.broadcast %cst_79 : f32 to vector<2x32xf32>
    %300 = arith.addf %299, %298 : vector<2x32xf32>
    %301 = arith.divf %299, %300 : vector<2x32xf32>
    %302 = arith.mulf %301, %270 : vector<2x32xf32>
    %303 = arith.negf %294 : vector<2x32xf32>
    %304 = math.exp %303 : vector<2x32xf32>
    %cst_80 = arith.constant 1.000000e+00 : f32
    %305 = vector.broadcast %cst_80 : f32 to vector<2x32xf32>
    %306 = arith.addf %305, %304 : vector<2x32xf32>
    %307 = arith.divf %305, %306 : vector<2x32xf32>
    %308 = math.tanh %296 : vector<2x32xf32>
    %309 = arith.mulf %307, %308 : vector<2x32xf32>
    %310 = arith.addf %302, %309 : vector<2x32xf32>
    %311 = arith.negf %295 : vector<2x32xf32>
    %312 = math.exp %311 : vector<2x32xf32>
    %cst_81 = arith.constant 1.000000e+00 : f32
    %313 = vector.broadcast %cst_81 : f32 to vector<2x32xf32>
    %314 = arith.addf %313, %312 : vector<2x32xf32>
    %315 = arith.divf %313, %314 : vector<2x32xf32>
    %316 = math.tanh %310 : vector<2x32xf32>
    %317 = arith.mulf %315, %316 : vector<2x32xf32>
    %318 = arith.index_cast %c7_i32 : i32 to index
    %c0_82 = arith.constant 0 : index
    %c0_83 = arith.constant 0 : index
    %319 = vector.load %arg4[%318, %c0_82, %c0_83] : memref<8x2x32xf32, #tpu.memory_space<vmem>>, vector<1x2x32xf32>
    %320 = vector.shape_cast %319 : vector<1x2x32xf32> to vector<2x32xf32>
    %321 = vector.shape_cast %317 : vector<2x32xf32> to vector<1x2x32xf32>
    tpu.vector_store %arg4[%318, %c0_82, %c0_83], %321 {strides = array<i32>} : memref<8x2x32xf32, #tpu.memory_space<vmem>>, vector<1x2x32xf32>,
    %322 = arith.index_cast %c7_i32 : i32 to index
    %c0_84 = arith.constant 0 : index
    %c0_85 = arith.constant 0 : index
    %323 = vector.load %arg5[%322, %c0_84, %c0_85] : memref<8x2x32xf32, #tpu.memory_space<vmem>>, vector<1x2x32xf32>
    %324 = vector.shape_cast %323 : vector<1x2x32xf32> to vector<2x32xf32>
    %325 = vector.shape_cast %310 : vector<2x32xf32> to vector<1x2x32xf32>
    tpu.vector_store %arg5[%322, %c0_84, %c0_85], %325 {strides = array<i32>} : memref<8x2x32xf32, #tpu.memory_space<vmem>>, vector<1x2x32xf32>,
    %c8_i32 = arith.constant 8 : i32
    %c0_86 = arith.constant 0 : index
    %c0_87 = arith.constant 0 : index
    %326 = vector.load %arg7[%c0_86, %c0_87] : memref<2x32xf32, #tpu.memory_space<vmem>>, vector<2x32xf32>
    tpu.vector_store %arg7[%c0_86, %c0_87], %317 {strides = array<i32>} : memref<2x32xf32, #tpu.memory_space<vmem>>, vector<2x32xf32>,
    %c0_88 = arith.constant 0 : index
    %c0_89 = arith.constant 0 : index
    %327 = vector.load %arg8[%c0_88, %c0_89] : memref<2x32xf32, #tpu.memory_space<vmem>>, vector<2x32xf32>
    tpu.vector_store %arg8[%c0_88, %c0_89], %310 {strides = array<i32>} : memref<2x32xf32, #tpu.memory_space<vmem>>, vector<2x32xf32>,
    return
  }
  func.func @transform_0(%arg0: i32, %arg1: i32) -> (i32, i32, i32) {
    %c0_i32 = arith.constant 0 : i32
    %c0_i32_0 = arith.constant 0 : i32
    return %arg1, %arg0, %c0_i32 : i32, i32, i32
  }
  func.func @transform_2(%arg0: i32, %arg1: i32) -> (i32, i32, i32) {
    %c0_i32 = arith.constant 0 : i32
    %c0_i32_0 = arith.constant 0 : i32
    return %arg1, %arg0, %c0_i32 : i32, i32, i32
  }
  func.func @transform_3(%arg0: i32, %arg1: i32) -> (i32, i32, i32) {
    %c0_i32 = arith.constant 0 : i32
    %c0_i32_0 = arith.constant 0 : i32
    return %arg1, %arg0, %c0_i32 : i32, i32, i32
  }
}

</mosaic_0001>

<bundles_post_ra>
// kernel: lstm_forward.1
= control target key start
LH: loop header
LB: loop body
LE: loop exit
PB: predicated region body
PF: predicated region fallthrough
CT: control target
= control target key end

     0   :  { %s951_s0 = inlined_call_operand.vmem [shape: bf16[8,2,128], index: 0, kind: input, shape index: {}]   ;;  %s952_s1 = inlined_call_operand.vmem [shape: bf16[32,128], index: 1, kind: input, shape index: {}]   ;;  %s953_s2 = inlined_call_operand.vmem [shape: f32[8,2,32], index: 2, kind: output, shape index: {0}]   ;;  %s954_s3 = inlined_call_operand.vmem [shape: f32[8,2,32], index: 3, kind: output, shape index: {1}]  }
   0x1   :  { %v26_v0 = vld [vmem:[%s952_s1] sm:$0xff]  ;;  %v28_v1 = vld [vmem:[%s952_s1 + $0x8] sm:$0xff] }
   0x2   :  { %27 = vst [vmem:[#allocation2] sm:$0xff] %v26_v0 }
   0x3   :  { %29 = vst [vmem:[#allocation2 + $0x8] sm:$0xff] %v28_v1 }
   0x4   :  { %35 = vsyncadd [#allocation5], 256 }
   0x5   :  { %765 = dma.done.wait [#allocation5], 256 }
   0x6   :  { %766 = vsyncadd [#allocation5], 4294967040  ;;  %vm40_vm0 = vcmask 254976   ;;  %v767_v2 = vmov 0.0   ;;  %vm64_vm1 = vcmask 261120   ;;  %s768_s17 = smov 64  }
   0x7   :  { %41 = vst.msk [vmem:[#allocation3] sm:$0x3] %vm40_vm0, %v767_v2  ;;  %v49_v7 = vld [vmem:[%s951_s0] sm:$0x1]  ;;  %s769_s18 = smov 96  }
   0x8   :  { %42 = vst.msk [vmem:[#allocation4] sm:$0x3] %vm40_vm0, %v767_v2  ;;  %v50_v8 = vunpack.c.l.bf16 %v49_v7  ;;  %v660_v37 = vld [vmem:[%s951_s0 + $0x1] sm:$0x1] }
   0x9   :  { %v696_v4 = vld [vmem:[#allocation2] sm:$0xff]  ;;  %v130_v38 = vunpack.c.l.bf16 %v660_v37 }
   0xa   :  { %v697_v3 = vld [vmem:[#allocation2 + $0x8] sm:$0xff] }
   0xb   :  { %74 = vmatpush.bf16.msra.mxu0 %v697_v3  ;;  %144 = vmatpush.bf16.msra.mxu1 %v697_v3 }
   0xc   :  { %215 = vmatpush.bf16.msra.mxu2 %v697_v3  ;;  %286 = vmatpush.bf16.msra.mxu3 %v697_v3 }
   0xe   :  { %v47_v5 = vld [vmem:[#allocation3] sm:$0x3] }
   0xf   :  { %v51_v6 = vpack.c.bf16 %v47_v5, %v47_v5  ;;  %75 = vmatpush.bf16.msra.mxu0 %v696_v4  ;;  %145 = vmatpush.bf16.msra.mxu1 %v696_v4  ;;  %v48_v28 = vld [vmem:[#allocation4] sm:$0x3] }
  0x10   :  { %216 = vmatpush.bf16.msra.mxu2 %v696_v4  ;;  %287 = vmatpush.bf16.msra.mxu3 %v696_v4 }
  0x12   :  { %658 = vmatmul.msk.bf16.vlgmr.msra.gmra.mxu0 %vm64_vm1, %v51_v6 }
  0x13   :  { %357 = vmatpush.bf16.msrb.mxu0 %v697_v3  ;;  %428 = vmatpush.bf16.msrb.mxu1 %v697_v3 }
  0x14   :  { %499 = vmatpush.bf16.msrb.mxu2 %v697_v3  ;;  %570 = vmatpush.bf16.msrb.mxu3 %v697_v3  ;;  %v665_v3 = vld [vmem:[%s951_s0 + $0x2] sm:$0x1] }
  0x17   :  { %358 = vmatpush.bf16.msrb.mxu0 %v696_v4  ;;  %429 = vmatpush.bf16.msrb.mxu1 %v696_v4 }
  0x18   :  { %500 = vmatpush.bf16.msrb.mxu2 %v696_v4  ;;  %571 = vmatpush.bf16.msrb.mxu3 %v696_v4  ;;  %v201_v4 = vunpack.c.l.bf16 %v665_v3 }
  0x8f   :  { %v77_v9 = vpop.f32.mrf.mxu0 }
  0x90   :  { %v81_v10 = vadd.f32 %v77_v9, %v50_v8 }
  0x92   :  { %701 = vtanh.f32 %v81_v10  ;;  %v659_v13 = vmul.f32 -1.442695, %v81_v10 }
  0x94   :  { %703 = vpow2.f32 %v659_v13 }
  0x97   :  { %v79_v11 = vpop.f32.mrf.mxu0 }
  0x98   :  { %v702_v12 = vpop.eup %701 }
  0x99   :  { %104 = vrot.lane.b32.xlu0 %v702_v12, %s768_s17 }
  0x9a   :  { %v704_v14 = vpop.eup %703 }
  0x9b   :  { %v85_v15 = vadd.f32 1.0, %v704_v14 }
  0x9d   :  { %705 = vrcp.f32 %v85_v15  ;;  %v97_v21 = vand.u32 2147483648, %v85_v15  ;;  %vm91_vm3 = vweird.f32 %v85_v15  ;;  %v95_v22 = vand.u32 2147483647, %v85_v15 }
  0x9f   :  { %v98_v24 = vor.u32 1.1754944e-38, %v97_v21  ;;  %vm96_vm5 = vcmp.eq.f32.partialorder %v95_v22, 8.507059e+37 }
  0xa3   :  { %v706_v16 = vpop.eup %705 }
  0xa4   :  { %v87_v17 = vmul.f32 %v706_v16, %v85_v15  ;;  %vm92_vm2 = vweird.f32 %v706_v16 }
  0xa5   :  { %vm93_vm4 = vmor %vm91_vm3, %vm92_vm2 }
  0xa6   :  { %v88_v18 = vsub.f32 1.0, %v87_v17 }
  0xa8   :  { %v89_v19 = vmul.f32 %v706_v16, %v88_v18 }
  0xaa   :  { %v90_v20 = vadd.f32 %v706_v16, %v89_v19 }
  0xac   :  { %v94_v23 = vsel %vm93_vm4, %v706_v16, %v90_v20 }
  0xad   :  { %v99_v26 = vsel %vm96_vm5, %v98_v24, %v94_v23 }
  0xae   :  { %v101_v29 = vmul.f32 %v99_v26, %v48_v28 }
 0x10b   :  { %v105_v25 = vpop.permute.xlu0 %104 }
 0x10c   :  { %v107_v27 = vmul.f32 %v105_v25, %v99_v26 }
 0x10e   :  { %109 = vrot.lane.b32.xlu0 %v107_v27, %s769_s18 }
 0x180   :  { %v110_v30 = vpop.permute.xlu0 %109 }
 0x181   :  { %v112_v31 = vadd.f32 %v110_v30, %v101_v29 }
 0x183   :  { %707 = vtanh.f32 %v112_v31  ;;  %127 = vst.msk [vmem:[%s954_s3] sm:$0x3] %vm40_vm0, %v112_v31 }
 0x189   :  { %v708_v32 = vpop.eup %707 }
 0x18a   :  { %115 = vrot.lane.b32.xlu1 %v708_v32, %s768_s17 }
 0x1fc   :  { %v116_v33 = vpop.permute.xlu1 %115 }
 0x1fd   :  { %v118_v34 = vmul.f32 %v116_v33, %v99_v26  ;;  %v670_v33 = vld [vmem:[%s951_s0 + $0x3] sm:$0x1] }
 0x1ff   :  { %120 = vst [vmem:[#allocation1] ss:$4 sm:$0xff] %v118_v34  ;;  %v131_v35 = vpack.c.bf16 %v118_v34, %v118_v34  ;;  %v272_v34 = vunpack.c.l.bf16 %v670_v33 }
 0x201   :  { %133 = vrot.lane.b32.xlu1 %v131_v35, %s768_s17 }
 0x206   :  { %v821_v0 = vld.sshfl [vmem:[#allocation1] sm:$0xff pattern:$0x73625140] }
 0x273   :  { %v134_v36 = vpop.permute.xlu1 %133 }
 0x274   :  { %661 = vmatmul.msk.bf16.vlgmr.msra.gmra.mxu1 %vm64_vm1, %v134_v36 }
 0x2f1   :  { %v147_v39 = vpop.f32.mrf.mxu1 }
 0x2f2   :  { %v151_v40 = vadd.f32 %v147_v39, %v130_v38 }
 0x2f4   :  { %709 = vtanh.f32 %v151_v40  ;;  %v662_v43 = vmul.f32 -1.442695, %v151_v40 }
 0x2f6   :  { %711 = vpow2.f32 %v662_v43 }
 0x2f9   :  { %v149_v41 = vpop.f32.mrf.mxu1 }
 0x2fa   :  { %v710_v42 = vpop.eup %709 }
 0x2fb   :  { %174 = vrot.lane.b32.xlu2 %v710_v42, %s768_s17 }
 0x2fc   :  { %v712_v44 = vpop.eup %711 }
 0x2fd   :  { %v155_v45 = vadd.f32 1.0, %v712_v44 }
 0x2ff   :  { %713 = vrcp.f32 %v155_v45  ;;  %v167_v51 = vand.u32 2147483648, %v155_v45  ;;  %vm161_vm7 = vweird.f32 %v155_v45  ;;  %v165_v52 = vand.u32 2147483647, %v155_v45 }
 0x301   :  { %v168_v54 = vor.u32 1.1754944e-38, %v167_v51  ;;  %vm166_vm9 = vcmp.eq.f32.partialorder %v165_v52, 8.507059e+37 }
 0x305   :  { %v714_v46 = vpop.eup %713 }
 0x306   :  { %v157_v47 = vmul.f32 %v714_v46, %v155_v45  ;;  %vm162_vm6 = vweird.f32 %v714_v46 }
 0x307   :  { %vm163_vm8 = vmor %vm161_vm7, %vm162_vm6 }
 0x308   :  { %v158_v48 = vsub.f32 1.0, %v157_v47 }
 0x30a   :  { %v159_v49 = vmul.f32 %v714_v46, %v158_v48 }
 0x30c   :  { %v160_v50 = vadd.f32 %v714_v46, %v159_v49 }
 0x30e   :  { %v164_v53 = vsel %vm163_vm8, %v714_v46, %v160_v50 }
 0x30f   :  { %v169_v56 = vsel %vm166_vm9, %v168_v54, %v164_v53 }
 0x310   :  { %v171_v58 = vmul.f32 %v169_v56, %v112_v31 }
 0x355   :  { %v175_v55 = vpop.permute.xlu2 %174 }
 0x356   :  { %v177_v57 = vmul.f32 %v175_v55, %v169_v56 }
 0x358   :  { %179 = vrot.lane.b32.xlu2 %v177_v57, %s769_s18 }
 0x3b2   :  { %v180_v59 = vpop.permute.xlu2 %179 }
 0x3b3   :  { %v182_v60 = vadd.f32 %v180_v59, %v171_v58 }
 0x3b5   :  { %715 = vtanh.f32 %v182_v60  ;;  %664 = vst.msk [vmem:[%s954_s3 + $0x2] sm:$0x3] %vm40_vm0, %v182_v60 }
 0x3bb   :  { %v716_v61 = vpop.eup %715 }
 0x3bc   :  { %185 = vrot.lane.b32.xlu0 %v716_v61, %s768_s17 }
 0x42e   :  { %v186_v62 = vpop.permute.xlu0 %185 }
 0x42f   :  { %v188_v63 = vmul.f32 %v186_v62, %v169_v56 }
 0x431   :  { %190 = vst [vmem:[#allocation1] ss:$4 sm:$0xff] %v188_v63  ;;  %v202_v1 = vpack.c.bf16 %v188_v63, %v188_v63  ;;  %v675_v63 = vld [vmem:[%s951_s0 + $0x4] sm:$0x1] }
 0x433   :  { %204 = vrot.lane.b32.xlu1 %v202_v1, %s768_s17  ;;  %v343_v1 = vunpack.c.l.bf16 %v675_v63 }
 0x438   :  { %v835_v30 = vld.sshfl [vmem:[#allocation1] sm:$0xff pattern:$0x73625140] }
 0x4a5   :  { %v205_v2 = vpop.permute.xlu1 %204 }
 0x4a6   :  { %666 = vmatmul.msk.bf16.vlgmr.msra.gmra.mxu2 %vm64_vm1, %v205_v2 }
 0x529   :  { %v218_v5 = vpop.f32.mrf.mxu2 }
 0x52a   :  { %v222_v6 = vadd.f32 %v218_v5, %v201_v4 }
 0x52c   :  { %717 = vtanh.f32 %v222_v6  ;;  %v667_v9 = vmul.f32 -1.442695, %v222_v6 }
 0x52e   :  { %719 = vpow2.f32 %v667_v9 }
 0x531   :  { %v220_v7 = vpop.f32.mrf.mxu2 }
 0x532   :  { %v718_v8 = vpop.eup %717 }
 0x533   :  { %245 = vrot.lane.b32.xlu2 %v718_v8, %s768_s17 }
 0x534   :  { %v720_v10 = vpop.eup %719 }
 0x535   :  { %v226_v11 = vadd.f32 1.0, %v720_v10 }
 0x537   :  { %721 = vrcp.f32 %v226_v11  ;;  %v238_v17 = vand.u32 2147483648, %v226_v11  ;;  %vm232_vm11 = vweird.f32 %v226_v11  ;;  %v236_v18 = vand.u32 2147483647, %v226_v11 }
 0x539   :  { %v239_v20 = vor.u32 1.1754944e-38, %v238_v17  ;;  %vm237_vm13 = vcmp.eq.f32.partialorder %v236_v18, 8.507059e+37 }
 0x53d   :  { %v722_v12 = vpop.eup %721 }
 0x53e   :  { %v228_v13 = vmul.f32 %v722_v12, %v226_v11  ;;  %vm233_vm10 = vweird.f32 %v722_v12 }
 0x53f   :  { %vm234_vm12 = vmor %vm232_vm11, %vm233_vm10 }
 0x540   :  { %v229_v14 = vsub.f32 1.0, %v228_v13 }
 0x542   :  { %v230_v15 = vmul.f32 %v722_v12, %v229_v14 }
 0x544   :  { %v231_v16 = vadd.f32 %v722_v12, %v230_v15 }
 0x546   :  { %v235_v19 = vsel %vm234_vm12, %v722_v12, %v231_v16 }
 0x547   :  { %v240_v22 = vsel %vm237_vm13, %v239_v20, %v235_v19 }
 0x548   :  { %v242_v24 = vmul.f32 %v240_v22, %v182_v60 }
 0x58d   :  { %v246_v21 = vpop.permute.xlu2 %245 }
 0x58e   :  { %v248_v23 = vmul.f32 %v246_v21, %v240_v22 }
 0x590   :  { %250 = vrot.lane.b32.xlu0 %v248_v23, %s769_s18 }
 0x602   :  { %v251_v25 = vpop.permute.xlu0 %250 }
 0x603   :  { %v253_v26 = vadd.f32 %v251_v25, %v242_v24 }
 0x605   :  { %723 = vtanh.f32 %v253_v26  ;;  %669 = vst.msk [vmem:[%s954_s3 + $0x4] sm:$0x3] %vm40_vm0, %v253_v26 }
 0x60b   :  { %v724_v27 = vpop.eup %723 }
 0x60c   :  { %256 = vrot.lane.b32.xlu1 %v724_v27, %s768_s17 }
 0x67e   :  { %v257_v28 = vpop.permute.xlu1 %256 }
 0x67f   :  { %v259_v29 = vmul.f32 %v257_v28, %v240_v22 }
 0x681   :  { %261 = vst [vmem:[#allocation1] ss:$4 sm:$0xff] %v259_v29  ;;  %v273_v31 = vpack.c.bf16 %v259_v29, %v259_v29 }
 0x683   :  { %275 = vrot.lane.b32.xlu2 %v273_v31, %s768_s17  ;;  %v680_v31 = vld [vmem:[%s951_s0 + $0x5] sm:$0x1] }
 0x688   :  { %v849_v60 = vld.sshfl [vmem:[#allocation1] sm:$0xff pattern:$0x73625140] }
 0x6dd   :  { %v276_v32 = vpop.permute.xlu2 %275 }
 0x6de   :  { %671 = vmatmul.msk.bf16.vlgmr.msra.gmra.mxu3 %vm64_vm1, %v276_v32  ;;  %v414_v32 = vunpack.c.l.bf16 %v680_v31  ;;  %v690_v31 = vld [vmem:[%s951_s0 + $0x7] sm:$0x1] }
 0x761   :  { %v289_v35 = vpop.f32.mrf.mxu3 }
 0x762   :  { %v293_v36 = vadd.f32 %v289_v35, %v272_v34 }
 0x764   :  { %725 = vtanh.f32 %v293_v36  ;;  %v672_v39 = vmul.f32 -1.442695, %v293_v36 }
 0x766   :  { %727 = vpow2.f32 %v672_v39 }
 0x769   :  { %v291_v37 = vpop.f32.mrf.mxu3 }
 0x76a   :  { %v726_v38 = vpop.eup %725 }
 0x76b   :  { %316 = vrot.lane.b32.xlu0 %v726_v38, %s768_s17 }
 0x76c   :  { %v728_v40 = vpop.eup %727 }
 0x76d   :  { %v297_v41 = vadd.f32 1.0, %v728_v40 }
 0x76f   :  { %729 = vrcp.f32 %v297_v41  ;;  %v309_v47 = vand.u32 2147483648, %v297_v41  ;;  %vm303_vm15 = vweird.f32 %v297_v41  ;;  %v307_v48 = vand.u32 2147483647, %v297_v41 }
 0x771   :  { %v310_v50 = vor.u32 1.1754944e-38, %v309_v47  ;;  %vm308_vm3 = vcmp.eq.f32.partialorder %v307_v48, 8.507059e+37 }
 0x775   :  { %v730_v42 = vpop.eup %729 }
 0x776   :  { %v299_v43 = vmul.f32 %v730_v42, %v297_v41  ;;  %vm304_vm14 = vweird.f32 %v730_v42 }
 0x777   :  { %vm305_vm2 = vmor %vm303_vm15, %vm304_vm14 }
 0x778   :  { %v300_v44 = vsub.f32 1.0, %v299_v43 }
 0x77a   :  { %v301_v45 = vmul.f32 %v730_v42, %v300_v44 }
 0x77c   :  { %v302_v46 = vadd.f32 %v730_v42, %v301_v45 }
 0x77e   :  { %v306_v49 = vsel %vm305_vm2, %v730_v42, %v302_v46 }
 0x77f   :  { %v311_v52 = vsel %vm308_vm3, %v310_v50, %v306_v49 }
 0x780   :  { %v313_v54 = vmul.f32 %v311_v52, %v253_v26 }
 0x7dd   :  { %v317_v51 = vpop.permute.xlu0 %316 }
 0x7de   :  { %v319_v53 = vmul.f32 %v317_v51, %v311_v52 }
 0x7e0   :  { %321 = vrot.lane.b32.xlu1 %v319_v53, %s769_s18 }
 0x852   :  { %v322_v55 = vpop.permute.xlu1 %321 }
 0x853   :  { %v324_v56 = vadd.f32 %v322_v55, %v313_v54 }
 0x855   :  { %731 = vtanh.f32 %v324_v56  ;;  %674 = vst.msk [vmem:[%s954_s3 + $0x6] sm:$0x3] %vm40_vm0, %v324_v56 }
 0x85b   :  { %v732_v57 = vpop.eup %731 }
 0x85c   :  { %327 = vrot.lane.b32.xlu2 %v732_v57, %s768_s17 }
 0x8b6   :  { %v328_v58 = vpop.permute.xlu2 %327 }
 0x8b7   :  { %v330_v59 = vmul.f32 %v328_v58, %v311_v52 }
 0x8b9   :  { %332 = vst [vmem:[#allocation1] ss:$4 sm:$0xff] %v330_v59  ;;  %v344_v61 = vpack.c.bf16 %v330_v59, %v330_v59 }
 0x8bb   :  { %346 = vrot.lane.b32.xlu0 %v344_v61, %s768_s17 }
 0x8c0   :  { %v863_v27 = vld.sshfl [vmem:[#allocation1] sm:$0xff pattern:$0x73625140] }
 0x92d   :  { %v347_v62 = vpop.permute.xlu0 %346 }
 0x92e   :  { %676 = vmatmul.msk.bf16.vlgmr.msrb.gmra.mxu0 %vm64_vm1, %v347_v62  ;;  %v685_v62 = vld [vmem:[%s951_s0 + $0x6] sm:$0x1] }
 0x92f   :  { %v485_v63 = vunpack.c.l.bf16 %v685_v62 }
 0x9ab   :  { %v360_v2 = vpop.f32.mrf.mxu0 }
 0x9ac   :  { %v364_v3 = vadd.f32 %v360_v2, %v343_v1 }
 0x9ae   :  { %733 = vtanh.f32 %v364_v3  ;;  %v677_v6 = vmul.f32 -1.442695, %v364_v3 }
 0x9b0   :  { %735 = vpow2.f32 %v677_v6 }
 0x9b3   :  { %v362_v4 = vpop.f32.mrf.mxu0 }
 0x9b4   :  { %v734_v5 = vpop.eup %733 }
 0x9b5   :  { %387 = vrot.lane.b32.xlu1 %v734_v5, %s768_s17 }
 0x9b6   :  { %v736_v7 = vpop.eup %735 }
 0x9b7   :  { %v368_v8 = vadd.f32 1.0, %v736_v7 }
 0x9b9   :  { %737 = vrcp.f32 %v368_v8  ;;  %v380_v14 = vand.u32 2147483648, %v368_v8  ;;  %vm374_vm5 = vweird.f32 %v368_v8  ;;  %v378_v15 = vand.u32 2147483647, %v368_v8 }
 0x9bb   :  { %v381_v17 = vor.u32 1.1754944e-38, %v380_v14  ;;  %vm379_vm7 = vcmp.eq.f32.partialorder %v378_v15, 8.507059e+37 }
 0x9bf   :  { %v738_v9 = vpop.eup %737 }
 0x9c0   :  { %v370_v10 = vmul.f32 %v738_v9, %v368_v8  ;;  %vm375_vm4 = vweird.f32 %v738_v9 }
 0x9c1   :  { %vm376_vm6 = vmor %vm374_vm5, %vm375_vm4 }
 0x9c2   :  { %v371_v11 = vsub.f32 1.0, %v370_v10 }
 0x9c4   :  { %v372_v12 = vmul.f32 %v738_v9, %v371_v11 }
 0x9c6   :  { %v373_v13 = vadd.f32 %v738_v9, %v372_v12 }
 0x9c8   :  { %v377_v16 = vsel %vm376_vm6, %v738_v9, %v373_v13 }
 0x9c9   :  { %v382_v19 = vsel %vm379_vm7, %v381_v17, %v377_v16 }
 0x9ca   :  { %v384_v21 = vmul.f32 %v382_v19, %v324_v56 }
 0xa27   :  { %v388_v18 = vpop.permute.xlu1 %387 }
 0xa28   :  { %v390_v20 = vmul.f32 %v388_v18, %v382_v19 }
 0xa2a   :  { %392 = vrot.lane.b32.xlu2 %v390_v20, %s769_s18 }
 0xa84   :  { %v393_v22 = vpop.permute.xlu2 %392 }
 0xa85   :  { %v395_v23 = vadd.f32 %v393_v22, %v384_v21 }
 0xa87   :  { %739 = vtanh.f32 %v395_v23  ;;  %679 = vst.msk [vmem:[%s954_s3 + $0x8] sm:$0x3] %vm40_vm0, %v395_v23 }
 0xa8d   :  { %v740_v24 = vpop.eup %739 }
 0xa8e   :  { %398 = vrot.lane.b32.xlu0 %v740_v24, %s768_s17 }
 0xb00   :  { %v399_v25 = vpop.permute.xlu0 %398 }
 0xb01   :  { %v401_v26 = vmul.f32 %v399_v25, %v382_v19 }
 0xb03   :  { %v415_v28 = vpack.c.bf16 %v401_v26, %v401_v26  ;;  %403 = vst [vmem:[#allocation1] ss:$4 sm:$0xff] %v401_v26 }
 0xb05   :  { %417 = vrot.lane.b32.xlu1 %v415_v28, %s768_s17 }
 0xb0a   :  { %v877_v58 = vld.sshfl [vmem:[#allocation1] sm:$0xff pattern:$0x73625140] }
 0xb77   :  { %v418_v29 = vpop.permute.xlu1 %417 }
 0xb78   :  { %681 = vmatmul.msk.bf16.vlgmr.msrb.gmra.mxu1 %vm64_vm1, %v418_v29 }
 0xbf5   :  { %v431_v33 = vpop.f32.mrf.mxu1 }
 0xbf6   :  { %v435_v34 = vadd.f32 %v431_v33, %v414_v32  ;;  %v556_v32 = vunpack.c.l.bf16 %v690_v31 }
 0xbf8   :  { %741 = vtanh.f32 %v435_v34  ;;  %v682_v37 = vmul.f32 -1.442695, %v435_v34 }
 0xbfa   :  { %743 = vpow2.f32 %v682_v37 }
 0xbfd   :  { %v433_v35 = vpop.f32.mrf.mxu1 }
 0xbfe   :  { %v742_v36 = vpop.eup %741 }
 0xbff   :  { %458 = vrot.lane.b32.xlu2 %v742_v36, %s768_s17 }
 0xc00   :  { %v744_v38 = vpop.eup %743 }
 0xc01   :  { %v439_v39 = vadd.f32 1.0, %v744_v38 }
 0xc03   :  { %745 = vrcp.f32 %v439_v39  ;;  %v451_v45 = vand.u32 2147483648, %v439_v39  ;;  %vm445_vm9 = vweird.f32 %v439_v39  ;;  %v449_v46 = vand.u32 2147483647, %v439_v39 }
 0xc05   :  { %v452_v48 = vor.u32 1.1754944e-38, %v451_v45  ;;  %vm450_vm11 = vcmp.eq.f32.partialorder %v449_v46, 8.507059e+37 }
 0xc09   :  { %v746_v40 = vpop.eup %745 }
 0xc0a   :  { %v441_v41 = vmul.f32 %v746_v40, %v439_v39  ;;  %vm446_vm8 = vweird.f32 %v746_v40 }
 0xc0b   :  { %vm447_vm10 = vmor %vm445_vm9, %vm446_vm8 }
 0xc0c   :  { %v442_v42 = vsub.f32 1.0, %v441_v41 }
 0xc0e   :  { %v443_v43 = vmul.f32 %v746_v40, %v442_v42 }
 0xc10   :  { %v444_v44 = vadd.f32 %v746_v40, %v443_v43 }
 0xc12   :  { %v448_v47 = vsel %vm447_vm10, %v746_v40, %v444_v44 }
 0xc13   :  { %v453_v50 = vsel %vm450_vm11, %v452_v48, %v448_v47 }
 0xc14   :  { %v455_v52 = vmul.f32 %v453_v50, %v395_v23 }
 0xc59   :  { %v459_v49 = vpop.permute.xlu2 %458 }
 0xc5a   :  { %v461_v51 = vmul.f32 %v459_v49, %v453_v50 }
 0xc5c   :  { %463 = vrot.lane.b32.xlu0 %v461_v51, %s769_s18 }
 0xcce   :  { %v464_v53 = vpop.permute.xlu0 %463 }
 0xccf   :  { %v466_v54 = vadd.f32 %v464_v53, %v455_v52 }
 0xcd1   :  { %747 = vtanh.f32 %v466_v54  ;;  %684 = vst.msk [vmem:[%s954_s3 + $0xa] sm:$0x3] %vm40_vm0, %v466_v54 }
 0xcd7   :  { %v748_v55 = vpop.eup %747 }
 0xcd8   :  { %469 = vrot.lane.b32.xlu1 %v748_v55, %s768_s17 }
 0xd4a   :  { %v470_v56 = vpop.permute.xlu1 %469 }
 0xd4b   :  { %v472_v57 = vmul.f32 %v470_v56, %v453_v50 }
 0xd4d   :  { %v486_v59 = vpack.c.bf16 %v472_v57, %v472_v57  ;;  %474 = vst [vmem:[#allocation1] ss:$4 sm:$0xff] %v472_v57 }
 0xd4f   :  { %488 = vrot.lane.b32.xlu2 %v486_v59, %s768_s17 }
 0xd54   :  { %v475_v26 = vld.sshfl [vmem:[#allocation1] sm:$0xff pattern:$0x73625140] }
 0xda9   :  { %v489_v61 = vpop.permute.xlu2 %488 }
 0xdaa   :  { %686 = vmatmul.msk.bf16.vlgmr.msrb.gmra.mxu2 %vm64_vm1, %v489_v61 }
 0xe2d   :  { %v502_v1 = vpop.f32.mrf.mxu2 }
 0xe2e   :  { %v506_v2 = vadd.f32 %v502_v1, %v485_v63 }
 0xe30   :  { %749 = vtanh.f32 %v506_v2  ;;  %v687_v5 = vmul.f32 -1.442695, %v506_v2 }
 0xe32   :  { %751 = vpow2.f32 %v687_v5 }
 0xe35   :  { %v504_v3 = vpop.f32.mrf.mxu2 }
 0xe36   :  { %v750_v4 = vpop.eup %749 }
 0xe37   :  { %529 = vrot.lane.b32.xlu0 %v750_v4, %s768_s17 }
 0xe38   :  { %v752_v6 = vpop.eup %751 }
 0xe39   :  { %v510_v7 = vadd.f32 1.0, %v752_v6 }
 0xe3b   :  { %753 = vrcp.f32 %v510_v7  ;;  %v522_v13 = vand.u32 2147483648, %v510_v7  ;;  %vm516_vm13 = vweird.f32 %v510_v7  ;;  %v520_v14 = vand.u32 2147483647, %v510_v7 }
 0xe3d   :  { %v523_v16 = vor.u32 1.1754944e-38, %v522_v13  ;;  %vm521_vm15 = vcmp.eq.f32.partialorder %v520_v14, 8.507059e+37 }
 0xe41   :  { %v754_v8 = vpop.eup %753 }
 0xe42   :  { %v512_v9 = vmul.f32 %v754_v8, %v510_v7  ;;  %vm517_vm12 = vweird.f32 %v754_v8 }
 0xe43   :  { %vm518_vm14 = vmor %vm516_vm13, %vm517_vm12 }
 0xe44   :  { %v513_v10 = vsub.f32 1.0, %v512_v9 }
 0xe46   :  { %v514_v11 = vmul.f32 %v754_v8, %v513_v10 }
 0xe48   :  { %v515_v12 = vadd.f32 %v754_v8, %v514_v11 }
 0xe4a   :  { %v519_v15 = vsel %vm518_vm14, %v754_v8, %v515_v12 }
 0xe4b   :  { %v524_v18 = vsel %vm521_vm15, %v523_v16, %v519_v15 }
 0xe4c   :  { %v526_v20 = vmul.f32 %v524_v18, %v466_v54 }
 0xea9   :  { %v530_v17 = vpop.permute.xlu0 %529 }
 0xeaa   :  { %v532_v19 = vmul.f32 %v530_v17, %v524_v18 }
 0xeac   :  { %534 = vrot.lane.b32.xlu1 %v532_v19, %s769_s18 }
 0xf1e   :  { %v535_v21 = vpop.permute.xlu1 %534 }
 0xf1f   :  { %v537_v22 = vadd.f32 %v535_v21, %v526_v20 }
 0xf21   :  { %755 = vtanh.f32 %v537_v22  ;;  %689 = vst.msk [vmem:[%s954_s3 + $0xc] sm:$0x3] %vm40_vm0, %v537_v22 }
 0xf27   :  { %v756_v23 = vpop.eup %755 }
 0xf28   :  { %540 = vrot.lane.b32.xlu2 %v756_v23, %s768_s17 }
 0xf82   :  { %v541_v24 = vpop.permute.xlu2 %540 }
 0xf83   :  { %v543_v25 = vmul.f32 %v541_v24, %v524_v18 }
 0xf85   :  { %v557_v28 = vpack.c.bf16 %v543_v25, %v543_v25  ;;  %545 = vst [vmem:[#allocation1] ss:$4 sm:$0xff] %v543_v25 }
 0xf87   :  { %559 = vrot.lane.b32.xlu0 %v557_v28, %s768_s17 }
 0xf8c   :  { %v546_v37 = vld.sshfl [vmem:[#allocation1] sm:$0xff pattern:$0x73625140] }
 0xff9   :  { %v560_v29 = vpop.permute.xlu0 %559 }
 0xffa   :  { %691 = vmatmul.msk.bf16.vlgmr.msrb.gmra.mxu3 %vm64_vm1, %v560_v29 }
0x107d   :  { %v573_v33 = vpop.f32.mrf.mxu3 }
0x107e   :  { %v577_v34 = vadd.f32 %v573_v33, %v556_v32 }
0x1080   :  { %757 = vtanh.f32 %v577_v34  ;;  %v692_v38 = vmul.f32 -1.442695, %v577_v34 }
0x1082   :  { %759 = vpow2.f32 %v692_v38 }
0x1085   :  { %v575_v35 = vpop.f32.mrf.mxu3 }
0x1086   :  { %v758_v36 = vpop.eup %757 }
0x1087   :  { %600 = vrot.lane.b32.xlu1 %v758_v36, %s768_s17 }
0x1088   :  { %v760_v39 = vpop.eup %759 }
0x1089   :  { %v581_v40 = vadd.f32 1.0, %v760_v39 }
0x108b   :  { %761 = vrcp.f32 %v581_v40  ;;  %v593_v46 = vand.u32 2147483648, %v581_v40  ;;  %vm587_vm2 = vweird.f32 %v581_v40 }
0x108f   :  { %122 = vrot.lane.b32.xlu1 %v821_v0, %s768_s17  ;;  %v591_v0 = vand.u32 2147483647, %v581_v40 }
0x1091   :  { %v762_v41 = vpop.eup %761  ;;  %vm592_vm4 = vcmp.eq.f32.partialorder %v591_v0, 8.507059e+37 }
0x1092   :  { %v583_v42 = vmul.f32 %v762_v41, %v581_v40  ;;  %vm588_vm1 = vweird.f32 %v762_v41 }
0x1093   :  { %vm589_vm3 = vmor %vm587_vm2, %vm588_vm1 }
0x1094   :  { %v584_v43 = vsub.f32 1.0, %v583_v42 }
0x1096   :  { %v585_v44 = vmul.f32 %v762_v41, %v584_v43 }
0x1097   :  { %334 = vrot.lane.b32.xlu1 %v863_v27, %s768_s17  ;;  %v594_v27 = vor.u32 1.1754944e-38, %v593_v46 }
0x1098   :  { %v586_v45 = vadd.f32 %v762_v41, %v585_v44 }
0x109a   :  { %v590_v47 = vsel %vm589_vm3, %v762_v41, %v586_v45 }
0x109b   :  { %v595_v49 = vsel %vm592_vm4, %v594_v27, %v590_v47 }
0x109c   :  { %v597_v54 = vmul.f32 %v595_v49, %v537_v22 }
0x109f   :  { %547 = vrot.lane.b32.xlu1 %v546_v37, %s768_s17 }
0x10f9   :  { %v601_v48 = vpop.permute.xlu1 %600 }
0x10fa   :  { %v603_v50 = vmul.f32 %v601_v48, %v595_v49 }
0x10fc   :  { %605 = vrot.lane.b32.xlu2 %v603_v50, %s769_s18 }
0x1101   :  { %v123_v51 = vpop.permute.xlu1 %122 }
0x1102   :  { %126 = vst.msk [vmem:[%s953_s2] sm:$0x3] %vm40_vm0, %v123_v51 }
0x1104   :  { %192 = vrot.lane.b32.xlu2 %v835_v30, %s768_s17 }
0x1109   :  { %v335_v52 = vpop.permute.xlu1 %334 }
0x110a   :  { %673 = vst.msk [vmem:[%s953_s2 + $0x6] sm:$0x3] %vm40_vm0, %v335_v52 }
0x110c   :  { %405 = vrot.lane.b32.xlu2 %v877_v58, %s768_s17 }
0x1111   :  { %v548_v53 = vpop.permute.xlu1 %547 }
0x1112   :  { %688 = vst.msk [vmem:[%s953_s2 + $0xc] sm:$0x3] %vm40_vm0, %v548_v53 }
0x1156   :  { %v606_v55 = vpop.permute.xlu2 %605 }
0x1157   :  { %v608_v56 = vadd.f32 %v606_v55, %v597_v54 }
0x1159   :  { %763 = vtanh.f32 %v608_v56  ;;  %694 = vst.msk [vmem:[%s954_s3 + $0xe] sm:$0x3] %vm40_vm0, %v608_v56 }
0x115a   :  { %631 = vst.msk [vmem:[#allocation4] sm:$0x3] %vm40_vm0, %v608_v56 }
0x115e   :  { %v193_v30 = vpop.permute.xlu2 %192 }
0x115f   :  { %v764_v57 = vpop.eup %763  ;;  %663 = vst.msk [vmem:[%s953_s2 + $0x2] sm:$0x3] %vm40_vm0, %v193_v30 }
0x1160   :  { %611 = vrot.lane.b32.xlu0 %v764_v57, %s768_s17 }
0x1166   :  { %v406_v58 = vpop.permute.xlu2 %405 }
0x1167   :  { %678 = vst.msk [vmem:[%s953_s2 + $0x8] sm:$0x3] %vm40_vm0, %v406_v58 }
0x1168   :  { %263 = vrot.lane.b32.xlu0 %v849_v60, %s768_s17 }
0x1170   :  { %476 = vrot.lane.b32.xlu0 %v475_v26, %s768_s17 }
0x11d2   :  { %v612_v59 = vpop.permute.xlu0 %611 }
0x11d3   :  { %v614_v61 = vmul.f32 %v612_v59, %v595_v49 }
0x11d5   :  { %616 = vst [vmem:[#allocation1] ss:$4 sm:$0xff] %v614_v61 }
0x11da   :  { %v264_v62 = vpop.permute.xlu0 %263 }
0x11db   :  { %668 = vst.msk [vmem:[%s953_s2 + $0x4] sm:$0x3] %vm40_vm0, %v264_v62 }
0x11dc   :  { %v617_v63 = vld.sshfl [vmem:[#allocation1] sm:$0xff pattern:$0x73625140] }
0x11dd   :  { %618 = vrot.lane.b32.xlu2 %v617_v63, %s768_s17  ;;  %625 = vst [vmem:[#allocation1] ss:$4 sm:$0xff] %v614_v61 }
0x11e2   :  { %v477_v1 = vpop.permute.xlu0 %476 }
0x11e3   :  { %683 = vst.msk [vmem:[%s953_s2 + $0xa] sm:$0x3] %vm40_vm0, %v477_v1 }
0x11e4   :  { %v626_v60 = vld.sshfl [vmem:[#allocation1] sm:$0xff pattern:$0x73625140] }
0x11e5   :  { %627 = vrot.lane.b32.xlu0 %v626_v60, %s768_s17 }
0x1237   :  { %v619_v2 = vpop.permute.xlu2 %618 }
0x1238   :  { %693 = vst.msk [vmem:[%s953_s2 + $0xe] sm:$0x3] %vm40_vm0, %v619_v2 }
0x1257   :  { %v628_v3 = vpop.permute.xlu0 %627 }
0x1258   :  { %630 = vst.msk [vmem:[#allocation3] sm:$0x3] %vm40_vm0, %v628_v3 }
0x1259   :  { %640 = vsyncmov [#allocation5] }
0x125c   :  { %s641_s9 = vpop.sfrf %640 }
0x125d   :  { %p695_p0 = scmp.ne.s32.totalorder %s641_s9, 0 }
0x125f   :  { %645 = shalt.err (%p695_p0)  }

</bundles_post_ra>
